<compile_context>
chip_gen: v7x
topology: tpu7x:2x2x1
jax: 0.10.0
libtpu: 0.0.40
codegen_flags: <defaults>
</compile_context>

<pallas_src>
import jax
import jax.numpy as jnp
from jax.experimental import pallas as pl
from jax.experimental.pallas import tpu as pltpu


def _round_up(n, m):
    return ((n + m - 1) // m) * m


def discriminator_kernel(
    x_ref,                      # (TB, I)            VMEM  f32
    w1_ref, b1_ref,             # (I,128), (1,128)   VMEM  (BN1-folded; W in compute dtype)
    w2_ref, b2_ref,             # (128,64), (1,64)   VMEM  (BN2-folded)
    w3_ref, b3_ref,             # (64,64), (1,64)    VMEM  (BN2-folded, shared 10x)
    w4d_ref,                    # (64,1)             VMEM  (W4[:,0]-W4[:,1])
    b4d_ref, alpha_ref,         # (1,1), (1,1)       SMEM scalars
    out_ref,                    # (TB, 2)            VMEM  f32
):
    a = alpha_ref[0, 0]         # shared PReLU slope (scalar, SMEM)
    b4d = b4d_ref[0, 0]
    cdt = w1_ref.dtype          # MXU operand dtype (bf16 by default, f32 optional)

    def prelu(h):
        return jnp.where(h >= 0, h, h * a)

    def dense(h, w, bias):
        # Cast LHS to the weight dtype at the dot only; accumulate in f32 and
        # keep the inter-layer activation carry in f32 (v5e-safe).
        return jnp.dot(h.astype(cdt), w, preferred_element_type=jnp.float32) + bias

    x = x_ref[...]
    n = x.shape[0]              # TB (static)

    # hidden: Linear -> PReLU   (BatchNorm1 scale folded into W1/b1, shift into b2)
    h = prelu(dense(x, w1_ref[...], b1_ref[...]))

    # hidden1: Linear -> PReLU  (BatchNorm2 scale folded into W2/b2, shift into b3)
    h = prelu(dense(h, w2_ref[...], b2_ref[...]))

    # 10x hidden2: Linear -> PReLU  (BatchNorm2 folded).
    # Hoist loop-invariants: W3 load and the bias broadcast (JAX does not CSE
    # broadcast_in_dim; with unroll=True it would otherwise materialize 10x).
    w3 = w3_ref[...]
    b3b = jnp.broadcast_to(b3_ref[...], (n, 64))

    def body(_, h):
        return prelu(jnp.dot(h.astype(cdt), w3,
                             preferred_element_type=jnp.float32) + b3b)

    h = jax.lax.fori_loop(0, 10, body, h, unroll=True)

    # predict + Softmax(dim=1) over 2 classes == sigmoid of the logit difference.
    d = jnp.dot(h.astype(cdt), w4d_ref[...],
                preferred_element_type=jnp.float32) + b4d          # (TB, 1)
    p0 = pl.reciprocal(1.0 + jnp.exp(-d), approx=True)             # EUP exp + vrcp
    cols = jax.lax.broadcasted_iota(jnp.int32, (n, 2), 1)
    out_ref[...] = jnp.where(cols == 0, p0, 1.0 - p0)              # exact row-sum = 1


def init_params(input_length, key):
    """Deterministic parameters (PyTorch-style uniform fan-in linears,
    non-trivial BatchNorm running stats so the BN fold is actually exercised)."""
    dims = [(input_length, 128), (128, 64), (64, 64), (64, 2)]
    keys = jax.random.split(key, 2 * len(dims) + 8)
    linears = []
    for i, (fin, fout) in enumerate(dims):
        bound = 1.0 / (fin ** 0.5)
        w = jax.random.uniform(keys[2 * i], (fin, fout), jnp.float32, -bound, bound)
        b = jax.random.uniform(keys[2 * i + 1], (1, fout), jnp.float32, -bound, bound)
        linears.append((w, b))

    eps = 1e-5
    bn_keys = keys[2 * len(dims):]

    def bn_fold(dim, k0, k1, k2, k3):
        # gamma kept > 0 (required for the exact BN->Linear fold below).
        gamma = jax.random.uniform(k0, (1, dim), jnp.float32, 0.5, 1.5)
        beta = 0.1 * jax.random.normal(k1, (1, dim), jnp.float32)
        rmean = 0.1 * jax.random.normal(k2, (1, dim), jnp.float32)
        rvar = jax.random.uniform(k3, (1, dim), jnp.float32, 0.5, 1.5)
        scale = gamma / jnp.sqrt(rvar + eps)
        shift = beta - rmean * scale
        return scale, shift

    bn1 = bn_fold(128, *bn_keys[0:4])
    bn2 = bn_fold(64, *bn_keys[4:8])
    alpha = jnp.full((1, 1), 0.25, jnp.float32)   # PReLU(num_parameters=1, init=0.25)
    return linears, bn1, bn2, alpha


def fold_params(linears, bn1, bn2, alpha, compute_dtype=jnp.bfloat16):
    """Fold eval-mode BatchNorm affine into adjacent linears (exact for scale>0):
       prelu(z)*s + t == prelu(z*s) + t,  and the additive shift t is absorbed
       into the NEXT layer's bias (t @ W_next + b_next).
       Weights are cast to `compute_dtype` (bf16 by default) for the MXU;
       biases stay f32 (added after the f32-accumulated matmul)."""
    (w1, b1), (w2, b2), (w3, b3), (w4, b4) = linears
    s1, t1 = bn1
    s2, t2 = bn2
    # Guard the fold assumption (gamma>0 => scale>0). Negative gamma would need
    # the unfolded per-layer BN apply instead.
    assert float(jnp.min(s1)) > 0.0 and float(jnp.min(s2)) > 0.0

    w1f = w1 * s1
    b1f = b1 * s1
    w2f = w2 * s2
    b2f = (b2 + t1 @ w2) * s2
    w3f = w3 * s2
    b3f = (b3 + t2 @ w3) * s2
    b4f = b4 + t2 @ w4                       # (1, 2)
    w4d = w4[:, 0:1] - w4[:, 1:2]            # (64, 1)
    b4d = b4f[:, 0:1] - b4f[:, 1:2]          # (1, 1)

    cd = compute_dtype
    return (w1f.astype(cd), b1f, w2f.astype(cd), b2f,
            w3f.astype(cd), b3f, w4d.astype(cd), b4d, alpha)


def discriminator_forward(x, params, *, block_batch=1024):
    """block_batch: desired batch tile (recommend 1024-2048; per-step overhead
    and MXU fill latency dominate at small tiles, and the VMEM footprint is
    tiny even on v7x's 64 MiB / v5e's 16 MiB scoped default).
    TB is rounded up to a multiple of 8 and capped so the grid has >= 2 steps
    (so both v7x TensorCores get work). Batch is zero-padded to a tile multiple."""
    w1, b1, w2, b2, w3, b3, w4d, b4d, alpha = params
    B, I = x.shape
    x = x.astype(jnp.float32)

    TB = _round_up(min(block_batch, B), 8)
    if B > 8:
        # >= 2 grid steps so the "parallel" batch axis shards across both TCs on v7x.
        TB = min(TB, _round_up((B + 1) // 2, 8))
    padded = _round_up(B, TB)
    if padded != B:
        x = jnp.pad(x, ((0, padded - B), (0, 0)))
    grid = (padded // TB,)

    def const2d(shape):
        # weights/biases: same block every grid step -> stay VMEM-resident.
        return pl.BlockSpec(shape, lambda i: (0, 0))

    smem_scalar = pl.BlockSpec(memory_space=pltpu.MemorySpace.SMEM)

    out = pl.pallas_call(
        discriminator_kernel,
        out_shape=jax.ShapeDtypeStruct((padded, 2), jnp.float32),
        grid=grid,
        in_specs=[
            pl.BlockSpec((TB, I), lambda i: (i, 0)),   # x: tiled over batch
            const2d((I, 128)), const2d((1, 128)),      # W1, b1
            const2d((128, 64)), const2d((1, 64)),      # W2, b2
            const2d((64, 64)), const2d((1, 64)),       # W3, b3
            const2d((64, 1)),                          # w4d
            smem_scalar, smem_scalar,                  # b4d, alpha
        ],
        out_specs=pl.BlockSpec((TB, 2), lambda i: (i, 0)),
        compiler_params=pltpu.CompilerParams(
            dimension_semantics=("parallel",),
        ),
    )(x, w1, b1, w2, b2, w3, b3, w4d, b4d, alpha)
    return out[:B]


def reference_forward(x, linears, bn1, bn2, alpha):
    """Pure-JAX eval-mode reference of the original (unfolded) module, in f32."""
    (w1, b1), (w2, b2), (w3, b3), (w4, b4) = linears
    s1, t1 = bn1
    s2, t2 = bn2
    a = alpha[0, 0]
    prelu = lambda h: jnp.where(h >= 0, h, a * h)

    h = prelu(x @ w1 + b1) * s1 + t1
    h = prelu(h @ w2 + b2) * s2 + t2
    for _ in range(10):
        h = prelu(h @ w3 + b3) * s2 + t2
    logits = h @ w4 + b4
    return jax.nn.softmax(logits, axis=1)


if __name__ == "__main__":
    INPUT_LENGTH = 32
    key = jax.random.PRNGKey(0)
    kx, kp, kx2 = jax.random.split(key, 3)

    linears, bn1, bn2, alpha = init_params(INPUT_LENGTH, kp)

    # --- structural correctness: f32 MXU operands, small odd batch, tiny tile ---
    B = 30                              # not a tile multiple -> exercises padding
    x = jax.random.normal(kx, (B, INPUT_LENGTH), jnp.float32)
    params_f32 = fold_params(linears, bn1, bn2, alpha, compute_dtype=jnp.float32)
    out = jax.block_until_ready(discriminator_forward(x, params_f32, block_batch=8))
    ref = reference_forward(x, linears, bn1, bn2, alpha)
    assert out.shape == (B, 2)
    # 2e-3 slack covers the EUP approx-reciprocal in the softmax.
    assert jnp.allclose(out, ref, atol=2e-3, rtol=2e-3), float(jnp.max(jnp.abs(out - ref)))
    assert jnp.allclose(jnp.sum(out, axis=1), 1.0, atol=1e-5)

    # --- performance path: bf16 MXU operands, larger batch, default big tile ---
    B2 = 1000                           # -> TB=504: multiple of 8, >=2 grid steps
    x2 = jax.random.normal(kx2, (B2, INPUT_LENGTH), jnp.float32)
    params_bf16 = fold_params(linears, bn1, bn2, alpha, compute_dtype=jnp.bfloat16)
    out2 = jax.block_until_ready(discriminator_forward(x2, params_bf16))
    ref2 = reference_forward(x2, linears, bn1, bn2, alpha)
    assert out2.shape == (B2, 2)
    # Deliberately loosened: bf16 operands across 13 stacked matmuls accumulate
    # rounding error vs the f32 reference (probabilities are bounded in [0,1]).
    assert jnp.allclose(out2, ref2, atol=3e-2, rtol=0.0), float(jnp.max(jnp.abs(out2 - ref2)))
    assert jnp.allclose(jnp.sum(out2, axis=1), 1.0, atol=1e-5)

    print("KERNEL_OK")
</pallas_src>

<mosaic_0001>
module attributes {stable_mosaic.version = 11 : i64} {
  func.func @discriminator_kernel(%arg0: i32, %arg1: memref<8x32xf32, #tpu.memory_space<vmem>>, %arg2: memref<32x128xf32, #tpu.memory_space<vmem>>, %arg3: memref<1x128xf32, #tpu.memory_space<vmem>>, %arg4: memref<128x64xf32, #tpu.memory_space<vmem>>, %arg5: memref<1x64xf32, #tpu.memory_space<vmem>>, %arg6: memref<64x64xf32, #tpu.memory_space<vmem>>, %arg7: memref<1x64xf32, #tpu.memory_space<vmem>>, %arg8: memref<64x1xf32, #tpu.memory_space<vmem>>, %arg9: memref<1x1xf32, #tpu.memory_space<smem>>, %arg10: memref<1x1xf32, #tpu.memory_space<smem>>, %arg11: memref<8x2xf32, #tpu.memory_space<vmem>>) attributes {dimension_semantics = [#tpu.dimension_semantics<parallel>], iteration_bounds = array<i64: 4>, scalar_prefetch = 0 : i64, scratch_operands = 0 : i64, tpu.core_type = #tpu.core_type<tc>, window_params = [{transform_indices = @transform_0, window_bounds = array<i64: 8, 32>}, {pipeline_mode = #tpu.pipeline_mode<synchronous>, transform_indices = @transform_1, window_bounds = array<i64: 32, 128>}, {pipeline_mode = #tpu.pipeline_mode<synchronous>, transform_indices = @transform_2, window_bounds = array<i64: 1, 128>}, {pipeline_mode = #tpu.pipeline_mode<synchronous>, transform_indices = @transform_3, window_bounds = array<i64: 128, 64>}, {pipeline_mode = #tpu.pipeline_mode<synchronous>, transform_indices = @transform_4, window_bounds = array<i64: 1, 64>}, {pipeline_mode = #tpu.pipeline_mode<synchronous>, transform_indices = @transform_5, window_bounds = array<i64: 64, 64>}, {pipeline_mode = #tpu.pipeline_mode<synchronous>, transform_indices = @transform_6, window_bounds = array<i64: 1, 64>}, {pipeline_mode = #tpu.pipeline_mode<synchronous>, transform_indices = @transform_7, window_bounds = array<i64: 64, 1>}, {transform_indices = @transform_8, window_bounds = array<i64: 1, 1>}, {transform_indices = @transform_9, window_bounds = array<i64: 1, 1>}, {transform_indices = @transform_10, window_bounds = array<i64: 8, 2>}]} {
    %c0 = arith.constant 0 : index
    %c0_0 = arith.constant 0 : index
    %0 = memref.load %arg10[%c0, %c0_0] : memref<1x1xf32, #tpu.memory_space<smem>>
    %c0_1 = arith.constant 0 : index
    %c0_2 = arith.constant 0 : index
    %1 = memref.load %arg9[%c0_1, %c0_2] : memref<1x1xf32, #tpu.memory_space<smem>>
    %c0_3 = arith.constant 0 : index
    %c0_4 = arith.constant 0 : index
    %2 = vector.load %arg1[%c0_3, %c0_4] : memref<8x32xf32, #tpu.memory_space<vmem>>, vector<8x32xf32>
    %c0_5 = arith.constant 0 : index
    %c0_6 = arith.constant 0 : index
    %3 = vector.load %arg2[%c0_5, %c0_6] : memref<32x128xf32, #tpu.memory_space<vmem>>, vector<32x128xf32>
    %c0_7 = arith.constant 0 : index
    %c0_8 = arith.constant 0 : index
    %4 = vector.load %arg3[%c0_7, %c0_8] : memref<1x128xf32, #tpu.memory_space<vmem>>, vector<1x128xf32>
    %cst = arith.constant dense<0.000000e+00> : vector<8x128xf32>
    %5 = tpu.matmul %2, %3, %cst {dimension_numbers = #tpu.dot_dimension_numbers<[1], [0], [0], [1], [0, 0, 1, 1], [], []>} : vector<8x32xf32>, vector<32x128xf32>, vector<8x128xf32> -> vector<8x128xf32>
    %6 = vector.broadcast %4 : vector<1x128xf32> to vector<8x128xf32>
    %7 = arith.addf %5, %6 : vector<8x128xf32>
    %cst_9 = arith.constant 0.000000e+00 : f32
    %8 = vector.broadcast %cst_9 : f32 to vector<8x128xf32>
    %9 = arith.cmpf oge, %7, %8 : vector<8x128xf32>
    %10 = vector.broadcast %0 : f32 to vector<8x128xf32>
    %11 = arith.mulf %7, %10 : vector<8x128xf32>
    %12 = arith.select %9, %7, %11 : vector<8x128xi1>, vector<8x128xf32>
    %c0_10 = arith.constant 0 : index
    %c0_11 = arith.constant 0 : index
    %13 = vector.load %arg4[%c0_10, %c0_11] : memref<128x64xf32, #tpu.memory_space<vmem>>, vector<128x64xf32>
    %c0_12 = arith.constant 0 : index
    %c0_13 = arith.constant 0 : index
    %14 = vector.load %arg5[%c0_12, %c0_13] : memref<1x64xf32, #tpu.memory_space<vmem>>, vector<1x64xf32>
    %cst_14 = arith.constant dense<0.000000e+00> : vector<8x64xf32>
    %15 = tpu.matmul %12, %13, %cst_14 {dimension_numbers = #tpu.dot_dimension_numbers<[1], [0], [0], [1], [0, 0, 1, 1], [], []>} : vector<8x128xf32>, vector<128x64xf32>, vector<8x64xf32> -> vector<8x64xf32>
    %16 = vector.broadcast %14 : vector<1x64xf32> to vector<8x64xf32>
    %17 = arith.addf %15, %16 : vector<8x64xf32>
    %cst_15 = arith.constant 0.000000e+00 : f32
    %18 = vector.broadcast %cst_15 : f32 to vector<8x64xf32>
    %19 = arith.cmpf oge, %17, %18 : vector<8x64xf32>
    %20 = vector.broadcast %0 : f32 to vector<8x64xf32>
    %21 = arith.mulf %17, %20 : vector<8x64xf32>
    %22 = arith.select %19, %17, %21 : vector<8x64xi1>, vector<8x64xf32>
    %c0_16 = arith.constant 0 : index
    %c0_17 = arith.constant 0 : index
    %23 = vector.load %arg6[%c0_16, %c0_17] : memref<64x64xf32, #tpu.memory_space<vmem>>, vector<64x64xf32>
    %c0_18 = arith.constant 0 : index
    %c0_19 = arith.constant 0 : index
    %24 = vector.load %arg7[%c0_18, %c0_19] : memref<1x64xf32, #tpu.memory_space<vmem>>, vector<1x64xf32>
    %25 = vector.shape_cast %24 : vector<1x64xf32> to vector<1x64xf32>
    %26 = vector.broadcast %25 : vector<1x64xf32> to vector<8x64xf32>
    %c0_i32 = arith.constant 0 : i32
    %cst_20 = arith.constant dense<0.000000e+00> : vector<8x64xf32>
    %27 = tpu.matmul %22, %23, %cst_20 {dimension_numbers = #tpu.dot_dimension_numbers<[1], [0], [0], [1], [0, 0, 1, 1], [], []>} : vector<8x64xf32>, vector<64x64xf32>, vector<8x64xf32> -> vector<8x64xf32>
    %28 = arith.addf %27, %26 : vector<8x64xf32>
    %cst_21 = arith.constant 0.000000e+00 : f32
    %29 = vector.broadcast %cst_21 : f32 to vector<8x64xf32>
    %30 = arith.cmpf oge, %28, %29 : vector<8x64xf32>
    %31 = vector.broadcast %0 : f32 to vector<8x64xf32>
    %32 = arith.mulf %28, %31 : vector<8x64xf32>
    %33 = arith.select %30, %28, %32 : vector<8x64xi1>, vector<8x64xf32>
    %c1_i32 = arith.constant 1 : i32
    %cst_22 = arith.constant dense<0.000000e+00> : vector<8x64xf32>
    %34 = tpu.matmul %33, %23, %cst_22 {dimension_numbers = #tpu.dot_dimension_numbers<[1], [0], [0], [1], [0, 0, 1, 1], [], []>} : vector<8x64xf32>, vector<64x64xf32>, vector<8x64xf32> -> vector<8x64xf32>
    %35 = arith.addf %34, %26 : vector<8x64xf32>
    %cst_23 = arith.constant 0.000000e+00 : f32
    %36 = vector.broadcast %cst_23 : f32 to vector<8x64xf32>
    %37 = arith.cmpf oge, %35, %36 : vector<8x64xf32>
    %38 = vector.broadcast %0 : f32 to vector<8x64xf32>
    %39 = arith.mulf %35, %38 : vector<8x64xf32>
    %40 = arith.select %37, %35, %39 : vector<8x64xi1>, vector<8x64xf32>
    %c2_i32 = arith.constant 2 : i32
    %cst_24 = arith.constant dense<0.000000e+00> : vector<8x64xf32>
    %41 = tpu.matmul %40, %23, %cst_24 {dimension_numbers = #tpu.dot_dimension_numbers<[1], [0], [0], [1], [0, 0, 1, 1], [], []>} : vector<8x64xf32>, vector<64x64xf32>, vector<8x64xf32> -> vector<8x64xf32>
    %42 = arith.addf %41, %26 : vector<8x64xf32>
    %cst_25 = arith.constant 0.000000e+00 : f32
    %43 = vector.broadcast %cst_25 : f32 to vector<8x64xf32>
    %44 = arith.cmpf oge, %42, %43 : vector<8x64xf32>
    %45 = vector.broadcast %0 : f32 to vector<8x64xf32>
    %46 = arith.mulf %42, %45 : vector<8x64xf32>
    %47 = arith.select %44, %42, %46 : vector<8x64xi1>, vector<8x64xf32>
    %c3_i32 = arith.constant 3 : i32
    %cst_26 = arith.constant dense<0.000000e+00> : vector<8x64xf32>
    %48 = tpu.matmul %47, %23, %cst_26 {dimension_numbers = #tpu.dot_dimension_numbers<[1], [0], [0], [1], [0, 0, 1, 1], [], []>} : vector<8x64xf32>, vector<64x64xf32>, vector<8x64xf32> -> vector<8x64xf32>
    %49 = arith.addf %48, %26 : vector<8x64xf32>
    %cst_27 = arith.constant 0.000000e+00 : f32
    %50 = vector.broadcast %cst_27 : f32 to vector<8x64xf32>
    %51 = arith.cmpf oge, %49, %50 : vector<8x64xf32>
    %52 = vector.broadcast %0 : f32 to vector<8x64xf32>
    %53 = arith.mulf %49, %52 : vector<8x64xf32>
    %54 = arith.select %51, %49, %53 : vector<8x64xi1>, vector<8x64xf32>
    %c4_i32 = arith.constant 4 : i32
    %cst_28 = arith.constant dense<0.000000e+00> : vector<8x64xf32>
    %55 = tpu.matmul %54, %23, %cst_28 {dimension_numbers = #tpu.dot_dimension_numbers<[1], [0], [0], [1], [0, 0, 1, 1], [], []>} : vector<8x64xf32>, vector<64x64xf32>, vector<8x64xf32> -> vector<8x64xf32>
    %56 = arith.addf %55, %26 : vector<8x64xf32>
    %cst_29 = arith.constant 0.000000e+00 : f32
    %57 = vector.broadcast %cst_29 : f32 to vector<8x64xf32>
    %58 = arith.cmpf oge, %56, %57 : vector<8x64xf32>
    %59 = vector.broadcast %0 : f32 to vector<8x64xf32>
    %60 = arith.mulf %56, %59 : vector<8x64xf32>
    %61 = arith.select %58, %56, %60 : vector<8x64xi1>, vector<8x64xf32>
    %c5_i32 = arith.constant 5 : i32
    %cst_30 = arith.constant dense<0.000000e+00> : vector<8x64xf32>
    %62 = tpu.matmul %61, %23, %cst_30 {dimension_numbers = #tpu.dot_dimension_numbers<[1], [0], [0], [1], [0, 0, 1, 1], [], []>} : vector<8x64xf32>, vector<64x64xf32>, vector<8x64xf32> -> vector<8x64xf32>
    %63 = arith.addf %62, %26 : vector<8x64xf32>
    %cst_31 = arith.constant 0.000000e+00 : f32
    %64 = vector.broadcast %cst_31 : f32 to vector<8x64xf32>
    %65 = arith.cmpf oge, %63, %64 : vector<8x64xf32>
    %66 = vector.broadcast %0 : f32 to vector<8x64xf32>
    %67 = arith.mulf %63, %66 : vector<8x64xf32>
    %68 = arith.select %65, %63, %67 : vector<8x64xi1>, vector<8x64xf32>
    %c6_i32 = arith.constant 6 : i32
    %cst_32 = arith.constant dense<0.000000e+00> : vector<8x64xf32>
    %69 = tpu.matmul %68, %23, %cst_32 {dimension_numbers = #tpu.dot_dimension_numbers<[1], [0], [0], [1], [0, 0, 1, 1], [], []>} : vector<8x64xf32>, vector<64x64xf32>, vector<8x64xf32> -> vector<8x64xf32>
    %70 = arith.addf %69, %26 : vector<8x64xf32>
    %cst_33 = arith.constant 0.000000e+00 : f32
    %71 = vector.broadcast %cst_33 : f32 to vector<8x64xf32>
    %72 = arith.cmpf oge, %70, %71 : vector<8x64xf32>
    %73 = vector.broadcast %0 : f32 to vector<8x64xf32>
    %74 = arith.mulf %70, %73 : vector<8x64xf32>
    %75 = arith.select %72, %70, %74 : vector<8x64xi1>, vector<8x64xf32>
    %c7_i32 = arith.constant 7 : i32
    %cst_34 = arith.constant dense<0.000000e+00> : vector<8x64xf32>
    %76 = tpu.matmul %75, %23, %cst_34 {dimension_numbers = #tpu.dot_dimension_numbers<[1], [0], [0], [1], [0, 0, 1, 1], [], []>} : vector<8x64xf32>, vector<64x64xf32>, vector<8x64xf32> -> vector<8x64xf32>
    %77 = arith.addf %76, %26 : vector<8x64xf32>
    %cst_35 = arith.constant 0.000000e+00 : f32
    %78 = vector.broadcast %cst_35 : f32 to vector<8x64xf32>
    %79 = arith.cmpf oge, %77, %78 : vector<8x64xf32>
    %80 = vector.broadcast %0 : f32 to vector<8x64xf32>
    %81 = arith.mulf %77, %80 : vector<8x64xf32>
    %82 = arith.select %79, %77, %81 : vector<8x64xi1>, vector<8x64xf32>
    %c8_i32 = arith.constant 8 : i32
    %cst_36 = arith.constant dense<0.000000e+00> : vector<8x64xf32>
    %83 = tpu.matmul %82, %23, %cst_36 {dimension_numbers = #tpu.dot_dimension_numbers<[1], [0], [0], [1], [0, 0, 1, 1], [], []>} : vector<8x64xf32>, vector<64x64xf32>, vector<8x64xf32> -> vector<8x64xf32>
    %84 = arith.addf %83, %26 : vector<8x64xf32>
    %cst_37 = arith.constant 0.000000e+00 : f32
    %85 = vector.broadcast %cst_37 : f32 to vector<8x64xf32>
    %86 = arith.cmpf oge, %84, %85 : vector<8x64xf32>
    %87 = vector.broadcast %0 : f32 to vector<8x64xf32>
    %88 = arith.mulf %84, %87 : vector<8x64xf32>
    %89 = arith.select %86, %84, %88 : vector<8x64xi1>, vector<8x64xf32>
    %c9_i32 = arith.constant 9 : i32
    %cst_38 = arith.constant dense<0.000000e+00> : vector<8x64xf32>
    %90 = tpu.matmul %89, %23, %cst_38 {dimension_numbers = #tpu.dot_dimension_numbers<[1], [0], [0], [1], [0, 0, 1, 1], [], []>} : vector<8x64xf32>, vector<64x64xf32>, vector<8x64xf32> -> vector<8x64xf32>
    %91 = arith.addf %90, %26 : vector<8x64xf32>
    %cst_39 = arith.constant 0.000000e+00 : f32
    %92 = vector.broadcast %cst_39 : f32 to vector<8x64xf32>
    %93 = arith.cmpf oge, %91, %92 : vector<8x64xf32>
    %94 = vector.broadcast %0 : f32 to vector<8x64xf32>
    %95 = arith.mulf %91, %94 : vector<8x64xf32>
    %96 = arith.select %93, %91, %95 : vector<8x64xi1>, vector<8x64xf32>
    %c0_40 = arith.constant 0 : index
    %c0_41 = arith.constant 0 : index
    %97 = vector.load %arg8[%c0_40, %c0_41] : memref<64x1xf32, #tpu.memory_space<vmem>>, vector<64x1xf32>
    %cst_42 = arith.constant dense<0.000000e+00> : vector<8x1xf32>
    %98 = tpu.matmul %96, %97, %cst_42 {dimension_numbers = #tpu.dot_dimension_numbers<[1], [0], [0], [1], [0, 0, 1, 1], [], []>} : vector<8x64xf32>, vector<64x1xf32>, vector<8x1xf32> -> vector<8x1xf32>
    %99 = vector.broadcast %1 : f32 to vector<8x1xf32>
    %100 = arith.addf %98, %99 : vector<8x1xf32>
    %cst_43 = arith.constant 0.000000e+00 : f32
    %101 = vector.broadcast %cst_43 : f32 to vector<8x1xf32>
    %102 = arith.subf %101, %100 : vector<8x1xf32>
    %103 = math.exp %102 : vector<8x1xf32>
    %cst_44 = arith.constant 1.000000e+00 : f32
    %104 = vector.broadcast %cst_44 : f32 to vector<8x1xf32>
    %105 = arith.addf %104, %103 : vector<8x1xf32>
    %106 = tpu.reciprocal %105 {approx = true} : vector<8x1xf32> -> vector<8x1xf32>
    %107 = tpu.iota {dimensions = array<i32: 1>} : vector<8x2xi32>
    %c0_i32_45 = arith.constant 0 : i32
    %108 = vector.broadcast %c0_i32_45 : i32 to vector<8x2xi32>
    %109 = arith.cmpi eq, %107, %108 : vector<8x2xi32>
    %cst_46 = arith.constant 1.000000e+00 : f32
    %110 = vector.broadcast %cst_46 : f32 to vector<8x1xf32>
    %111 = arith.subf %110, %106 : vector<8x1xf32>
    %112 = vector.shape_cast %106 : vector<8x1xf32> to vector<8x1xf32>
    %113 = vector.broadcast %112 : vector<8x1xf32> to vector<8x2xf32>
    %114 = vector.shape_cast %111 : vector<8x1xf32> to vector<8x1xf32>
    %115 = vector.broadcast %114 : vector<8x1xf32> to vector<8x2xf32>
    %116 = arith.select %109, %113, %115 : vector<8x2xi1>, vector<8x2xf32>
    %c0_47 = arith.constant 0 : index
    %c0_48 = arith.constant 0 : index
    %117 = vector.load %arg11[%c0_47, %c0_48] : memref<8x2xf32, #tpu.memory_space<vmem>>, vector<8x2xf32>
    tpu.vector_store %arg11[%c0_47, %c0_48], %116 {strides = array<i32>} : memref<8x2xf32, #tpu.memory_space<vmem>>, vector<8x2xf32>,
    return
  }
  func.func @transform_0(%arg0: i32) -> (i32, i32) {
    %c0_i32 = arith.constant 0 : i32
    %c0_i32_0 = arith.constant 0 : i32
    return %arg0, %c0_i32 : i32, i32
  }
  func.func @transform_1(%arg0: i32) -> (i32, i32) {
    %c0_i32 = arith.constant 0 : i32
    %c0_i32_0 = arith.constant 0 : i32
    %c0_i32_1 = arith.constant 0 : i32
    return %c0_i32, %c0_i32_0 : i32, i32
  }
  func.func @transform_2(%arg0: i32) -> (i32, i32) {
    %c0_i32 = arith.constant 0 : i32
    %c0_i32_0 = arith.constant 0 : i32
    %c0_i32_1 = arith.constant 0 : i32
    return %c0_i32, %c0_i32_0 : i32, i32
  }
  func.func @transform_3(%arg0: i32) -> (i32, i32) {
    %c0_i32 = arith.constant 0 : i32
    %c0_i32_0 = arith.constant 0 : i32
    %c0_i32_1 = arith.constant 0 : i32
    return %c0_i32, %c0_i32_0 : i32, i32
  }
  func.func @transform_4(%arg0: i32) -> (i32, i32) {
    %c0_i32 = arith.constant 0 : i32
    %c0_i32_0 = arith.constant 0 : i32
    %c0_i32_1 = arith.constant 0 : i32
    return %c0_i32, %c0_i32_0 : i32, i32
  }
  func.func @transform_5(%arg0: i32) -> (i32, i32) {
    %c0_i32 = arith.constant 0 : i32
    %c0_i32_0 = arith.constant 0 : i32
    %c0_i32_1 = arith.constant 0 : i32
    return %c0_i32, %c0_i32_0 : i32, i32
  }
  func.func @transform_6(%arg0: i32) -> (i32, i32) {
    %c0_i32 = arith.constant 0 : i32
    %c0_i32_0 = arith.constant 0 : i32
    %c0_i32_1 = arith.constant 0 : i32
    return %c0_i32, %c0_i32_0 : i32, i32
  }
  func.func @transform_7(%arg0: i32) -> (i32, i32) {
    %c0_i32 = arith.constant 0 : i32
    %c0_i32_0 = arith.constant 0 : i32
    %c0_i32_1 = arith.constant 0 : i32
    return %c0_i32, %c0_i32_0 : i32, i32
  }
  func.func @transform_8(%arg0: i32) -> (i32, i32) {
    %c0_i32 = arith.constant 0 : i32
    %c0_i32_0 = arith.constant 0 : i32
    %c0_i32_1 = arith.constant 0 : i32
    return %c0_i32, %c0_i32_0 : i32, i32
  }
  func.func @transform_9(%arg0: i32) -> (i32, i32) {
    %c0_i32 = arith.constant 0 : i32
    %c0_i32_0 = arith.constant 0 : i32
    %c0_i32_1 = arith.constant 0 : i32
    return %c0_i32, %c0_i32_0 : i32, i32
  }
  func.func @transform_10(%arg0: i32) -> (i32, i32) {
    %c0_i32 = arith.constant 0 : i32
    %c0_i32_0 = arith.constant 0 : i32
    return %arg0, %c0_i32 : i32, i32
  }
}

</mosaic_0001>

<bundles_post_ra>
// kernel: tpu_custom_call.1
= control target key start
LH: loop header
LB: loop body
LE: loop exit
PB: predicated region body
PF: predicated region fallthrough
CT: control target
= control target key end

     0   :  { %s2130_s17 = smov 0   ;;  %s2436_s0 = inlined_call_operand.vmem [shape: f32[32,32], index: 0, kind: input, shape index: {}]   ;;  %s2437_s1 = inlined_call_operand.vmem [shape: f32[32,128], index: 1, kind: input, shape index: {}]   ;;  %s2438_s2 = inlined_call_operand.vmem [shape: f32[1,128], index: 2, kind: input, shape index: {}]   ;;  %s2439_s3 = inlined_call_operand.vmem [shape: f32[128,64], index: 3, kind: input, shape index: {}]   ;;  %s2440_s4 = inlined_call_operand.vmem [shape: f32[1,64], index: 4, kind: input, shape index: {}]   ;;  %s2441_s5 = inlined_call_operand.vmem [shape: f32[64,64], index: 5, kind: input, shape index: {}]   ;;  %s2442_s6 = inlined_call_operand.vmem [shape: f32[1,64], index: 6, kind: input, shape index: {}]   ;;  %s2443_s7 = inlined_call_operand.vmem [shape: f32[64,1], index: 7, kind: input, shape index: {}]   ;;  %s2444_s8 = inlined_call_operand.<no memory space> [shape: f32[1,1], index: 8, kind: input, shape index: {}]   ;;  %s2445_s9 = inlined_call_operand.<no memory space> [shape: f32[1,1], index: 9, kind: input, shape index: {}]   ;;  %s2446_s10 = inlined_call_operand.vmem [shape: f32[32,2], index: 10, kind: output, shape index: {}]  }
   0x1   :  { %15 = sst [smem:[#allocation2]] %s2444_s8 }
   0x2   :  { %16 = sst [smem:[#allocation3]] %s2445_s9 }
   0x3 LB: > { %s1478_s18 = sadd.s32 4294967295, %s2063_s17   ;;  %p1482_p0 = scmp.ge.s32.totalorder %s2063_s17, 1  ;;  %s2063_s17 = sphi %s2130_s17, %s22_s17  }
   0x4   : > { %p313_p1 = scmp.lt.s32.totalorder %s2063_s17, 5 }
   0x6   : > { %p314_p2 = pnand %p1482_p0, %p313_p1 }
   0x7   : > { %v360_v0 = vld [vmem:[%s2437_s1] sm:$0xff] (!%p314_p2)  ;;  %v361_v1 = vld [vmem:[%s2437_s1 + $0x8] sm:$0xff] (!%p314_p2)  ;;  %v362_v2 = vld [vmem:[%s2437_s1 + $0x10] sm:$0xff] (!%p314_p2)  ;;  %v2065_v3 = vmov (!%p314_p2), 0.0|0.0   ;;  %vm2066_vm0 = vmmov (!%p314_p2), 0   ;;  %v2067_v6 = vmov (!%p314_p2), 0.0  }
   0x8   : > { %317 = sbr.rel (%p314_p2) target bundleno = 2999 (0xbb7), region = 60  ;;  %1878 = vmatprep.subr.bf16.mxu0 (!%p314_p2), %v2065_v3  ;;  %v1879_v4 = vpack.c.bf16 (!%p314_p2), %v361_v1, %v360_v0  ;;  %v363_v5 = vld [vmem:[%s2437_s1 + $0x18] sm:$0xff] (!%p314_p2)  ;;  %1631 = vmatprep.mubr.msk.f32.mxu0 (!%p314_p2), %vm2066_vm0, %v2067_v6  ;;  %p349_p3 = scmp.lt.s32.totalorder (!%p314_p2), %s1478_s18, 3  ;;  %v449_v7 = vld [vmem:[%s2439_s3] sm:$0xff] (!%p314_p2)  ;;  %v450_v8 = vld [vmem:[%s2439_s3 + $0x8] sm:$0xff] (!%p314_p2)  ;;  %vm371_vm1 = vcmask (!%p314_p2), 261120  }
   0x9   : > { %1884 = vmatprep.subr.bf16.mxu1 (!%p314_p2), %v2065_v3  ;;  %v1885_v9 = vpack.c.bf16 (!%p314_p2), %v450_v8, %v449_v7  ;;  %v451_v10 = vld [vmem:[%s2439_s3 + $0x10] sm:$0xff] (!%p314_p2)  ;;  %v452_v11 = vld [vmem:[%s2439_s3 + $0x18] sm:$0xff] (!%p314_p2)  ;;  %1666 = vmatprep.mubr.msk.f32.mxu1 (!%p314_p2), %vm2066_vm0, %v2067_v6  ;;  %v1882_v12 = vpack.c.bf16 (!%p314_p2), %v363_v5, %v362_v2  ;;  %v453_v14 = vld [vmem:[%s2439_s3 + $0x20] sm:$0xff] (!%p314_p2)  ;;  %s357_s15 = sld [smem:[#allocation3]] (!%p314_p2)  ;;  %vm560_vm4 = vcmask (!%p314_p2), 523264  }
   0xa   : > { %1880 = vmatpush3.bf16.msra.mxu0 (!%p314_p2), %v1879_v4  ;;  %v1888_v13 = vpack.c.bf16 (!%p314_p2), %v452_v11, %v451_v10  ;;  %v454_v15 = vld [vmem:[%s2439_s3 + $0x28] sm:$0xff] (!%p314_p2)  ;;  %v455_v18 = vld [vmem:[%s2439_s3 + $0x30] sm:$0xff] (!%p314_p2)  ;;  %v456_v19 = vld [vmem:[%s2439_s3 + $0x38] sm:$0xff] (!%p314_p2)  ;;  %s358_s23 = sld [smem:[#allocation2]] (!%p314_p2) }
   0xb   : > { %1881 = vmatprep.subr.bf16.mxu0 (!%p314_p2), %v2065_v3  ;;  %1886 = vmatpush3.bf16.msra.mxu1 (!%p314_p2), %v1885_v9  ;;  %v1891_v17 = vpack.c.bf16 (!%p314_p2), %v454_v15, %v453_v14  ;;  %v1894_v20 = vpack.c.bf16 (!%p314_p2), %v456_v19, %v455_v18  ;;  %v457_v21 = vld [vmem:[%s2439_s3 + $0x40] sm:$0xff] (!%p314_p2)  ;;  %v458_v22 = vld [vmem:[%s2439_s3 + $0x48] sm:$0xff] (!%p314_p2)  ;;  %v459_v24 = vld [vmem:[%s2439_s3 + $0x50] sm:$0xff] (!%p314_p2) }
   0xc   : > { %1887 = vmatprep.subr.bf16.mxu1 (!%p314_p2), %v2065_v3  ;;  %v1897_v23 = vpack.c.bf16 (!%p314_p2), %v458_v22, %v457_v21  ;;  %v460_v25 = vld [vmem:[%s2439_s3 + $0x58] sm:$0xff] (!%p314_p2)  ;;  %v461_v27 = vld [vmem:[%s2439_s3 + $0x60] sm:$0xff] (!%p314_p2)  ;;  %v462_v28 = vld [vmem:[%s2439_s3 + $0x68] sm:$0xff] (!%p314_p2) }
   0xd   : > { %v1900_v26 = vpack.c.bf16 (!%p314_p2), %v460_v25, %v459_v24  ;;  %v1903_v29 = vpack.c.bf16 (!%p314_p2), %v462_v28, %v461_v27  ;;  %v463_v30 = vld [vmem:[%s2439_s3 + $0x70] sm:$0xff] (!%p314_p2)  ;;  %v464_v31 = vld [vmem:[%s2439_s3 + $0x78] sm:$0xff] (!%p314_p2)  ;;  %v545_v33 = vld [vmem:[%s2441_s5] sm:$0xff] (!%p314_p2) }
   0xe   : > { %1883 = vmatpush3.bf16.msra.mxu0 (!%p314_p2), %v1882_v12  ;;  %v1906_v32 = vpack.c.bf16 (!%p314_p2), %v464_v31, %v463_v30  ;;  %v546_v34 = vld [vmem:[%s2441_s5 + $0x8] sm:$0xff] (!%p314_p2)  ;;  %v547_v35 = vld [vmem:[%s2441_s5 + $0x10] sm:$0xff] (!%p314_p2)  ;;  %v548_v37 = vld [vmem:[%s2441_s5 + $0x18] sm:$0xff] (!%p314_p2) }
   0xf   : > { %s2448_s18 = smov (!%p349_p3, %s1478_s18), 3  ;;  %1889 = vmatpush3.bf16.msra.mxu1 %v1888_v13  ;;  %1908 = vmatprep.subr.bf16.mxu0 %v2065_v3  ;;  %v2233_v36 = vpack.c.bf16 %v546_v34, %v545_v33  ;;  %v2239_v38 = vpack.c.bf16 %v548_v37, %v547_v35  ;;  %v549_v39 = vld [vmem:[%s2441_s5 + $0x20] sm:$0xff]  ;;  %v550_v40 = vld [vmem:[%s2441_s5 + $0x28] sm:$0xff]  ;;  %v2257_v44 = vstv %s357_s15  ;;  %v551_v49 = vld [vmem:[%s2441_s5 + $0x30] sm:$0xff] }
  0x10   : > { %s1483_s13 = sshll.u32 %s2448_s18, 3  ;;  %1890 = vmatprep.subr.bf16.mxu1 %v2065_v3  ;;  %v2249_v41 = vpack.c.bf16 %v550_v40, %v549_v39  ;;  %v1485_v42 = vld [vmem:[%s2438_s2] ss:$0 sm:$0xff]  ;;  %v552_v50 = vld [vmem:[%s2441_s5 + $0x38] sm:$0xff]  ;;  %v1323_v39 = vld [vmem:[%s2443_s7 + $0x10] sm:$0xff] }
  0x11   : > { %s352_s20 = scalar_lea.vmem %s2436_s0, %s1483_s13  ;;  %v2274_v51 = vpack.c.bf16 %v552_v50, %v551_v49  ;;  %v1487_v52 = vld [vmem:[%s2440_s4] ss:$0 sm:$0xff]  ;;  %s356_s26 = scalar_lea.vmem %s2446_s10, %s1483_s13 }
  0x12   : > { %v359_v16 = vld [vmem:[%s352_s20] sm:$0xff] }
  0x13   : > { %1632 = vmatmul.mubr.msk.f32.vlgmr.msra.gmra.mrb[0].mxu0 %vm371_vm1, %v359_v16  ;;  %1892 = vmatpush3.bf16.msra.mxu1 %v1891_v17  ;;  %v2298_v58 = vld [vmem:[%s2442_s6] ss:$0 sm:$0xff] }
  0x14   : > { %1685 = vmatprep.mubr.msk.f32.mxu0 %vm2066_vm0, %v2067_v6  ;;  %1893 = vmatprep.subr.bf16.mxu1 %v2065_v3  ;;  %v1321_v37 = vld [vmem:[%s2443_s7] sm:$0xff] }
  0x15   : > { %1910 = vmatpush3.bf16.msra.mxu0 %v2233_v36 }
  0x16   : > { %1911 = vmatprep.subr.bf16.mxu0 %v2065_v3 }
  0x17   : > { %1895 = vmatpush3.bf16.msra.mxu1 %v1894_v20 }
  0x18   : > { %1896 = vmatprep.subr.bf16.mxu1 %v2065_v3 }
  0x19   : > { %1913 = vmatpush3.bf16.msra.mxu0 %v2239_v38 }
  0x1a   : > { %1914 = vmatprep.subr.bf16.mxu0 %v2065_v3 }
  0x1b   : > { %1898 = vmatpush3.bf16.msra.mxu1 %v1897_v23 }
  0x1c   : > { %1899 = vmatprep.subr.bf16.mxu1 %v2065_v3 }
  0x1d   : > { %1916 = vmatpush3.bf16.msra.mxu0 %v2249_v41 }
  0x1e   : > { %1917 = vmatprep.subr.bf16.mxu0 %v2065_v3 }
  0x1f   : > { %1901 = vmatpush3.bf16.msra.mxu1 %v1900_v26 }
  0x20   : > { %1902 = vmatprep.subr.bf16.mxu1 %v2065_v3 }
  0x21   : > { %1919 = vmatpush3.bf16.msra.mxu0 %v2274_v51 }
  0x22   : > { %1920 = vmatprep.subr.bf16.mxu0 %v2065_v3 }
  0x23   : > { %1904 = vmatpush3.bf16.msra.mxu1 %v1903_v29 }
  0x24   : > { %1905 = vmatprep.subr.bf16.mxu1 %v2065_v3 }
  0x27   : > { %1907 = vmatpush3.bf16.msra.mxu1 %v1906_v32 }
  0x28   : > { %1932 = vmatprep.subr.bf16.mxu1 %v2065_v3 }
  0xe6   : > { %v441_v43 = vpop.f32.mrb[0].mxu0 }
  0xe7   : > { %v442_v45 = vadd.f32 %v1485_v42, %v441_v43  ;;  %v1633_v46 = vpop.f32.mrb[1].mxu0  ;;  %v1326_v43 = vld [vmem:[%s2443_s7 + $0x28] sm:$0xff] }
  0xe9   : > { %v447_v47 = vmul.f32 %v2257_v44, %v442_v45  ;;  %vm445_vm2 = vcmp.ge.f32.partialorder %v442_v45, 0.0 }
  0xeb   : > { %v448_v48 = vsel %vm445_vm2, %v442_v45, %v447_v47 }
  0xec   : > { %1667 = vmatmul.mubr.f32.vlgmr.msra.gmra.mrb[0].mxu1 %v448_v48 }
  0xed   : > { %1934 = vmatpush3.bf16.msra.mxu1 %v2233_v36  ;;  %1723 = vmatprep.mubr.msk.f32.mxu1 %vm2066_vm0, %v2067_v6 }
  0xee   : > { %1935 = vmatprep.subr.bf16.mxu1 %v2065_v3 }
  0xf1   : > { %1937 = vmatpush3.bf16.msra.mxu1 %v2239_v38 }
  0xf2   : > { %1938 = vmatprep.subr.bf16.mxu1 %v2065_v3 }
  0xf5   : > { %1940 = vmatpush3.bf16.msra.mxu1 %v2249_v41 }
  0xf6   : > { %1941 = vmatprep.subr.bf16.mxu1 %v2065_v3 }
  0xf9   : > { %1943 = vmatpush3.bf16.msra.mxu1 %v2274_v51 }
  0xfa   : > { %1956 = vmatprep.subr.bf16.mxu1 %v2065_v3 }
 0x1bf   : > { %v538_v53 = vpop.f32.mrb[0].mxu1 }
 0x1c0   : > { %v539_v54 = vadd.f32 %v1487_v52, %v538_v53  ;;  %v1668_v55 = vpop.f32.mrb[1].mxu1  ;;  %v1328_v52 = vld [vmem:[%s2443_s7 + $0x38] sm:$0xff] }
 0x1c2   : > { %vm542_vm3 = vcmp.ge.f32.partialorder %v539_v54, 0.0  ;;  %v543_v56 = vmul.f32 %v539_v54, %v2257_v44 }
 0x1c4   : > { %v544_v57 = vsel %vm542_vm3, %v539_v54, %v543_v56 }
 0x1c5   : > { %1686 = vmatmul.mubr.msk.f32.vlgmr.msra.gmra.mrb[2].mxu0 %vm560_vm4, %v544_v57 }
 0x1c6   : > { %1922 = vmatpush3.bf16.msra.mxu0 %v2233_v36  ;;  %1704 = vmatprep.mubr.msk.f32.mxu0 %vm2066_vm0, %v2067_v6 }
 0x1c7   : > { %1923 = vmatprep.subr.bf16.mxu0 %v2065_v3 }
 0x1ca   : > { %1925 = vmatpush3.bf16.msra.mxu0 %v2239_v38 }
 0x1cb   : > { %1926 = vmatprep.subr.bf16.mxu0 %v2065_v3 }
 0x1ce   : > { %1928 = vmatpush3.bf16.msra.mxu0 %v2249_v41 }
 0x1cf   : > { %1929 = vmatprep.subr.bf16.mxu0 %v2065_v3 }
 0x1d2   : > { %1931 = vmatpush3.bf16.msra.mxu0 %v2274_v51 }
 0x1d3   : > { %1944 = vmatprep.subr.bf16.mxu0 %v2065_v3 }
 0x298   : > { %v630_v59 = vpop.f32.mrb[2].mxu0 }
 0x299   : > { %v631_v60 = vadd.f32 %v2298_v58, %v630_v59  ;;  %v1687_v61 = vpop.f32.mrb[3].mxu0  ;;  %v2068_v59 = vmov 0  }
 0x29a   : > { %2052 = vset.pattern.permute.xlu0 %v2068_v59 }
 0x29b   : > { %vm634_vm5 = vcmp.ge.f32.partialorder %v631_v60, 0.0  ;;  %v635_v62 = vmul.f32 %v631_v60, %v2257_v44 }
 0x29d   : > { %v636_v63 = vsel %vm634_vm5, %v631_v60, %v635_v62  ;;  %v1329_v60 = vstv %s358_s23 }
 0x29e   : > { %1705 = vmatmul.mubr.msk.f32.vlgmr.msra.gmra.mrb[4].mxu0 %vm560_vm4, %v636_v63 }
 0x29f   : > { %1946 = vmatpush3.bf16.msra.mxu0 %v2233_v36  ;;  %1742 = vmatprep.mubr.msk.f32.mxu0 %vm2066_vm0, %v2067_v6 }
 0x2a0   : > { %1947 = vmatprep.subr.bf16.mxu0 %v2065_v3 }
 0x2a3   : > { %1949 = vmatpush3.bf16.msra.mxu0 %v2239_v38 }
 0x2a4   : > { %1950 = vmatprep.subr.bf16.mxu0 %v2065_v3 }
 0x2a7   : > { %1952 = vmatpush3.bf16.msra.mxu0 %v2249_v41 }
 0x2a8   : > { %1953 = vmatprep.subr.bf16.mxu0 %v2065_v3 }
 0x2ab   : > { %1955 = vmatpush3.bf16.msra.mxu0 %v2274_v51 }
 0x2ac   : > { %1968 = vmatprep.subr.bf16.mxu0 %v2065_v3 }
 0x371   : > { %v706_v0 = vpop.f32.mrb[4].mxu0 }
 0x372   : > { %v707_v1 = vadd.f32 %v2298_v58, %v706_v0  ;;  %v1706_v2 = vpop.f32.mrb[5].mxu0 }
 0x374   : > { %vm710_vm6 = vcmp.ge.f32.partialorder %v707_v1, 0.0  ;;  %v711_v4 = vmul.f32 %v707_v1, %v2257_v44 }
 0x376   : > { %v712_v5 = vsel %vm710_vm6, %v707_v1, %v711_v4 }
 0x377   : > { %1724 = vmatmul.mubr.msk.f32.vlgmr.msra.gmra.mrb[2].mxu1 %vm560_vm4, %v712_v5  ;;  %v1408_v5 = vlaneseq }
 0x378   : > { %1958 = vmatpush3.bf16.msra.mxu1 %v2233_v36  ;;  %1761 = vmatprep.mubr.msk.f32.mxu1 %vm2066_vm0, %v2067_v6 }
 0x379   : > { %1959 = vmatprep.subr.bf16.mxu1 %v2065_v3 }
 0x37c   : > { %1961 = vmatpush3.bf16.msra.mxu1 %v2239_v38 }
 0x37d   : > { %1962 = vmatprep.subr.bf16.mxu1 %v2065_v3 }
 0x380   : > { %1964 = vmatpush3.bf16.msra.mxu1 %v2249_v41 }
 0x381   : > { %1965 = vmatprep.subr.bf16.mxu1 %v2065_v3 }
 0x384   : > { %1967 = vmatpush3.bf16.msra.mxu1 %v2274_v51 }
 0x385   : > { %1980 = vmatprep.subr.bf16.mxu1 %v2065_v3 }
 0x44a   : > { %v782_v7 = vpop.f32.mrb[2].mxu1 }
 0x44b   : > { %v783_v8 = vadd.f32 %v2298_v58, %v782_v7  ;;  %v1725_v9 = vpop.f32.mrb[3].mxu1  ;;  %v1409_v7 = vand.u32 127, %v1408_v5 }
 0x44d   : > { %vm786_vm7 = vcmp.ge.f32.partialorder %v783_v8, 0.0  ;;  %v787_v10 = vmul.f32 %v783_v8, %v2257_v44  ;;  %vm1410_vm15 = vcmp.eq.s32.totalorder %v1409_v7, 0 }
 0x44f   : > { %v788_v11 = vsel %vm786_vm7, %v783_v8, %v787_v10 }
 0x450   : > { %1743 = vmatmul.mubr.msk.f32.vlgmr.msra.gmra.mrb[6].mxu0 %vm560_vm4, %v788_v11 }
 0x451   : > { %1970 = vmatpush3.bf16.msra.mxu0 %v2233_v36  ;;  %1780 = vmatprep.mubr.msk.f32.mxu0 %vm2066_vm0, %v2067_v6 }
 0x452   : > { %1971 = vmatprep.subr.bf16.mxu0 %v2065_v3 }
 0x455   : > { %1973 = vmatpush3.bf16.msra.mxu0 %v2239_v38 }
 0x456   : > { %1974 = vmatprep.subr.bf16.mxu0 %v2065_v3 }
 0x459   : > { %1976 = vmatpush3.bf16.msra.mxu0 %v2249_v41 }
 0x45a   : > { %1977 = vmatprep.subr.bf16.mxu0 %v2065_v3 }
 0x45d   : > { %1979 = vmatpush3.bf16.msra.mxu0 %v2274_v51 }
 0x45e   : > { %1992 = vmatprep.subr.bf16.mxu0 %v2065_v3 }
 0x523   : > { %v858_v12 = vpop.f32.mrb[6].mxu0 }
 0x524   : > { %v859_v13 = vadd.f32 %v2298_v58, %v858_v12  ;;  %v1744_v14 = vpop.f32.mrb[7].mxu0 }
 0x526   : > { %vm862_vm8 = vcmp.ge.f32.partialorder %v859_v13, 0.0  ;;  %v863_v15 = vmul.f32 %v859_v13, %v2257_v44 }
 0x528   : > { %v864_v16 = vsel %vm862_vm8, %v859_v13, %v863_v15 }
 0x529   : > { %1762 = vmatmul.mubr.msk.f32.vlgmr.msra.gmra.mrb[4].mxu1 %vm560_vm4, %v864_v16 }
 0x52a   : > { %1982 = vmatpush3.bf16.msra.mxu1 %v2233_v36  ;;  %1799 = vmatprep.mubr.msk.f32.mxu1 %vm2066_vm0, %v2067_v6 }
 0x52b   : > { %1983 = vmatprep.subr.bf16.mxu1 %v2065_v3 }
 0x52e   : > { %1985 = vmatpush3.bf16.msra.mxu1 %v2239_v38 }
 0x52f   : > { %1986 = vmatprep.subr.bf16.mxu1 %v2065_v3 }
 0x532   : > { %1988 = vmatpush3.bf16.msra.mxu1 %v2249_v41 }
 0x533   : > { %1989 = vmatprep.subr.bf16.mxu1 %v2065_v3 }
 0x536   : > { %1991 = vmatpush3.bf16.msra.mxu1 %v2274_v51 }
 0x537   : > { %2004 = vmatprep.subr.bf16.mxu1 %v2065_v3 }
 0x5fc   : > { %v934_v17 = vpop.f32.mrb[4].mxu1 }
 0x5fd   : > { %v935_v18 = vadd.f32 %v2298_v58, %v934_v17  ;;  %v1763_v19 = vpop.f32.mrb[5].mxu1 }
 0x5ff   : > { %vm938_vm9 = vcmp.ge.f32.partialorder %v935_v18, 0.0  ;;  %v939_v20 = vmul.f32 %v935_v18, %v2257_v44 }
 0x601   : > { %v940_v21 = vsel %vm938_vm9, %v935_v18, %v939_v20 }
 0x602   : > { %1781 = vmatmul.mubr.msk.f32.vlgmr.msra.gmra.mrb[8].mxu0 %vm560_vm4, %v940_v21 }
 0x603   : > { %1994 = vmatpush3.bf16.msra.mxu0 %v2233_v36  ;;  %1818 = vmatprep.mubr.msk.f32.mxu0 %vm2066_vm0, %v2067_v6 }
 0x604   : > { %1995 = vmatprep.subr.bf16.mxu0 %v2065_v3 }
 0x607   : > { %1997 = vmatpush3.bf16.msra.mxu0 %v2239_v38 }
 0x608   : > { %1998 = vmatprep.subr.bf16.mxu0 %v2065_v3 }
 0x60b   : > { %2000 = vmatpush3.bf16.msra.mxu0 %v2249_v41 }
 0x60c   : > { %2001 = vmatprep.subr.bf16.mxu0 %v2065_v3 }
 0x60f   : > { %2003 = vmatpush3.bf16.msra.mxu0 %v2274_v51 }
 0x610   : > { %2016 = vmatprep.subr.bf16.mxu0 %v2065_v3 }
 0x6d5   : > { %v1010_v22 = vpop.f32.mrb[8].mxu0 }
 0x6d6   : > { %v1011_v23 = vadd.f32 %v2298_v58, %v1010_v22  ;;  %v1782_v24 = vpop.f32.mrb[9].mxu0 }
 0x6d8   : > { %vm1014_vm10 = vcmp.ge.f32.partialorder %v1011_v23, 0.0  ;;  %v1015_v25 = vmul.f32 %v1011_v23, %v2257_v44 }
 0x6da   : > { %v1016_v26 = vsel %vm1014_vm10, %v1011_v23, %v1015_v25 }
 0x6db   : > { %1800 = vmatmul.mubr.msk.f32.vlgmr.msra.gmra.mrb[6].mxu1 %vm560_vm4, %v1016_v26 }
 0x6dc   : > { %2006 = vmatpush3.bf16.msra.mxu1 %v2233_v36  ;;  %1837 = vmatprep.mubr.msk.f32.mxu1 %vm2066_vm0, %v2067_v6 }
 0x6dd   : > { %2007 = vmatprep.subr.bf16.mxu1 %v2065_v3 }
 0x6e0   : > { %2009 = vmatpush3.bf16.msra.mxu1 %v2239_v38 }
 0x6e1   : > { %2010 = vmatprep.subr.bf16.mxu1 %v2065_v3 }
 0x6e4   : > { %2012 = vmatpush3.bf16.msra.mxu1 %v2249_v41 }
 0x6e5   : > { %2013 = vmatprep.subr.bf16.mxu1 %v2065_v3 }
 0x6e8   : > { %2015 = vmatpush3.bf16.msra.mxu1 %v2274_v51 }
 0x6e9   : > { %2028 = vmatprep.subr.bf16.mxu1 %v2065_v3 }
 0x7ae   : > { %v1086_v27 = vpop.f32.mrb[6].mxu1 }
 0x7af   : > { %v1087_v28 = vadd.f32 %v2298_v58, %v1086_v27  ;;  %v1801_v29 = vpop.f32.mrb[7].mxu1 }
 0x7b1   : > { %vm1090_vm11 = vcmp.ge.f32.partialorder %v1087_v28, 0.0  ;;  %v1091_v30 = vmul.f32 %v1087_v28, %v2257_v44 }
 0x7b3   : > { %v1092_v31 = vsel %vm1090_vm11, %v1087_v28, %v1091_v30 }
 0x7b4   : > { %1819 = vmatmul.mubr.msk.f32.vlgmr.msra.gmra.mrb[10].mxu0 %vm560_vm4, %v1092_v31 }
 0x7b5   : > { %2018 = vmatpush3.bf16.msra.mxu0 %v2233_v36  ;;  %1856 = vmatprep.mubr.msk.f32.mxu0 %vm2066_vm0, %v2067_v6 }
 0x7b6   : > { %2019 = vmatprep.subr.bf16.mxu0 %v2065_v3 }
 0x7b9   : > { %2021 = vmatpush3.bf16.msra.mxu0 %v2239_v38  ;;  %v1322_v38 = vld [vmem:[%s2443_s7 + $0x8] sm:$0xff] }
 0x7ba   : > { %2022 = vmatprep.subr.bf16.mxu0 %v2065_v3  ;;  %v2029_v40 = vpack.c.bf16 %v1322_v38, %v1321_v37 }
 0x7bd   : > { %2024 = vmatpush3.bf16.msra.mxu0 %v2249_v41  ;;  %v1324_v41 = vld [vmem:[%s2443_s7 + $0x18] sm:$0xff] }
 0x7be   : > { %2025 = vmatprep.subr.bf16.mxu0 %v2065_v3  ;;  %v2032_v42 = vpack.c.bf16 %v1324_v41, %v1323_v39 }
 0x7c1   : > { %2027 = vmatpush3.bf16.msra.mxu0 %v2274_v51  ;;  %v1327_v51 = vld [vmem:[%s2443_s7 + $0x30] sm:$0xff] }
 0x7c2   : > { %v2038_v53 = vpack.c.bf16 %v1328_v52, %v1327_v51 }
 0x887   : > { %v1162_v32 = vpop.f32.mrb[10].mxu0 }
 0x888   : > { %v1163_v33 = vadd.f32 %v2298_v58, %v1162_v32  ;;  %v1820_v34 = vpop.f32.mrb[11].mxu0 }
 0x88a   : > { %vm1166_vm12 = vcmp.ge.f32.partialorder %v1163_v33, 0.0  ;;  %v1167_v35 = vmul.f32 %v1163_v33, %v2257_v44 }
 0x88c   : > { %v1168_v36 = vsel %vm1166_vm12, %v1163_v33, %v1167_v35 }
 0x88d   : > { %1838 = vmatmul.mubr.msk.f32.vlgmr.msra.gmra.mrb[8].mxu1 %vm560_vm4, %v1168_v36 }
 0x88e   : > { %1875 = vmatprep.mubr.msk.f32.mxu1 %vm2066_vm0, %v2067_v6  ;;  %2030 = vmatpush3.bf16.msra.mxu1 %v2029_v40  ;;  %v1325_v6 = vld [vmem:[%s2443_s7 + $0x20] sm:$0xff]  ;;  %vm1423_vm0 = vcmask 15360  }
 0x88f   : > { %2031 = vmatprep.subr.bf16.mxu1 %v2065_v3  ;;  %v2035_v45 = vpack.c.bf16 %v1326_v43, %v1325_v6 }
 0x892   : > { %2033 = vmatpush3.bf16.msra.mxu1 %v2032_v42 }
 0x893   : > { %2034 = vmatprep.subr.bf16.mxu1 %v2065_v3 }
 0x896   : > { %2036 = vmatpush3.bf16.msra.mxu1 %v2035_v45 }
 0x897   : > { %2037 = vmatprep.subr.bf16.mxu1 %v2065_v3 }
 0x89a   : > { %2039 = vmatpush3.bf16.msra.mxu1 %v2038_v53 }
 0x960   : > { %v1238_v46 = vpop.f32.mrb[8].mxu1 }
 0x961   : > { %v1239_v47 = vadd.f32 %v2298_v58, %v1238_v46  ;;  %v1839_v48 = vpop.f32.mrb[9].mxu1 }
 0x963   : > { %vm1242_vm13 = vcmp.ge.f32.partialorder %v1239_v47, 0.0  ;;  %v1243_v49 = vmul.f32 %v1239_v47, %v2257_v44 }
 0x965   : > { %v1244_v50 = vsel %vm1242_vm13, %v1239_v47, %v1243_v49 }
 0x966   : > { %1857 = vmatmul.mubr.msk.f32.vlgmr.msra.gmra.mrb[12].mxu0 %vm560_vm4, %v1244_v50 }
 0xa39   : > { %v1314_v3 = vpop.f32.mrb[12].mxu0 }
 0xa3a   : > { %v1315_v54 = vadd.f32 %v2298_v58, %v1314_v3  ;;  %v1858_v55 = vpop.f32.mrb[13].mxu0 }
 0xa3c   : > { %vm1318_vm14 = vcmp.ge.f32.partialorder %v1315_v54, 0.0  ;;  %v1319_v56 = vmul.f32 %v1315_v54, %v2257_v44 }
 0xa3e   : > { %v1320_v57 = vsel %vm1318_vm14, %v1315_v54, %v1319_v56 }
 0xa3f   : > { %1876 = vmatmul.mubr.msk.f32.vlgmr.msra.gmra.mrb[10].mxu1 %vm560_vm4, %v1320_v57 }
 0xb12   : > { %v1399_v61 = vpop.f32.mrb[10].mxu1 }
 0xb13   : > { %v1400_v62 = vadd.f32 %v1399_v61, %v1329_v60  ;;  %v1877_v63 = vpop.f32.mrb[11].mxu1 }
 0xb15   : > { %v1403_v0 = vsub.f32 0.0, %v1400_v62 }
 0xb17   : > { %v1404_v1 = vmul.f32 1.442695, %v1403_v0 }
 0xb19   : > { %2053 = vpow2.f32 %v1404_v1 }
 0xb23   : > { %v2054_v2 = vpop.eup %2053 }
 0xb24   : > { %v1406_v58 = vadd.f32 1.0, %v2054_v2 }
 0xb26   : > { %2055 = vrcp.f32 %v1406_v58 }
 0xb30   : > { %v2056_v4 = vpop.eup %2055 }
 0xb31   : > { %1414 = vperm.xlu0 %2052, %v2056_v4   ;;  %v1411_v44 = vsub.f32 1.0, %v2056_v4 }
 0xb35   : > { %1419 = vperm.xlu0 %2052, %v1411_v44  }
 0xbb0   : > { %v1415_v8 = vpop.permute.xlu0 %1414 }
 0xbb4   : > { %v1420_v9 = vpop.permute.xlu0 %1419 }
 0xbb5   : > { %v1422_v10 = vsel %vm1410_vm15, %v1415_v8, %v1420_v9 }
 0xbb6   : > { %1424 = vst.msk [vmem:[%s356_s26] sm:$0xff] %vm1423_vm0, %v1422_v10 }
 0xbb7 PF: > { %s22_s17 = sadd.s32 1, %s2063_s17  }
 0xbb8   : > { %p19_p4 = scmp.ge.s32.totalorder %s22_s17, 6  }
 0xbba   :  { %21 = sbr.rel (!%p19_p4) target bundleno = 3 (0x3), region = 90 }

</bundles_post_ra>
